<compile_context>
chip_gen: v7x
topology: tpu7x:2x2x1
jax: 0.10.0
libtpu: 0.0.40
codegen_flags: <defaults>
</compile_context>

<pallas_src>
import functools

import jax
import jax.numpy as jnp
from jax.experimental import pallas as pl
from jax.experimental.pallas import tpu as pltpu


def _featurizer_kernel(x_ref, w_ref, b_ref, g_ref, beta_ref, seg_ref, segt_ref,
                       o_ref, *, d, eps):
    """One row-tile of: per-frame LayerNorm(GELU(frames @ W + b)) * gamma + beta.

    x_ref:    (tm, G*K)  packed frames (f32)
    w_ref:    (G*K, G*D) block-diagonal projection weight (bf16, resident)
    b/g/beta: (1, G*D)   per-frame params tiled G times (f32, resident)
    seg_ref:  (G*D, G)   segment-sum matrix (f32, resident)
    segt_ref: (G, G*D)   segment-broadcast matrix (f32, resident)
    o_ref:    (tm, G*D)  output (bf16)
    """
    x = x_ref[...]
    w = w_ref[...]

    # Conv-as-matmul on the MXU (bf16 inputs, f32 accumulate).  The block-
    # diagonal zeros are free: the MXU pads K to 128 regardless.
    h = jnp.dot(x.astype(w.dtype), w, preferred_element_type=jnp.float32)
    h = h + b_ref[...]

    # GELU (tanh approximation) on VPU/EUP.
    # TODO(synk): torch nn.GELU defaults to the exact erf form; tanh approx kept
    # from v1 (no concrete torch featurizer exists to match against).
    h = jax.nn.gelu(h, approximate=True)

    # Segmented (per-frame) LayerNorm.  Per-segment sums are done as tiny MXU
    # matmuls with a (G*D, G) block-indicator matrix; stats are broadcast back
    # to (tm, G*D) with its (G, G*D) transpose.  One pass over h, no narrow
    # XLU reductions.
    seg = seg_ref[...]
    segt = segt_ref[...]
    inv_d = jnp.float32(1.0 / d)
    s1 = jnp.dot(h, seg, preferred_element_type=jnp.float32) * inv_d       # mean   (tm, G)
    s2 = jnp.dot(h * h, seg, preferred_element_type=jnp.float32) * inv_d   # E[x^2] (tm, G)
    inv = jax.lax.rsqrt(s2 - s1 * s1 + eps)                                # 1/std  (tm, G)
    mean_b = jnp.dot(s1, segt, preferred_element_type=jnp.float32)         # (tm, G*D)
    inv_b = jnp.dot(inv, segt, preferred_element_type=jnp.float32)         # (tm, G*D)

    h = (h - mean_b) * inv_b
    h = h * g_ref[...] + beta_ref[...]
    o_ref[...] = h.astype(o_ref.dtype)


def speech_featurizer(waveform, w, b, gamma, beta, *, frame_len,
                      group=8, tm=2048, out_dtype=jnp.bfloat16, eps=1e-5):
    """waveform: (B, T) float32.  Returns (B, num_patches, embed_dim) in out_dtype."""
    B, T = waveform.shape
    K, D = w.shape
    assert K == frame_len
    assert T % frame_len == 0, "T must be a multiple of frame_len"
    num_patches = T // frame_len

    # --- frames-per-row packing factor -------------------------------------
    # Pick G so that both the packed input width (G*K) and output width (G*D)
    # are lane-dense (>= 128) without blowing up the block-diagonal weight
    # when K/D are already large.  G must divide num_patches so packed rows
    # never straddle a batch element.
    g_target = max(pl.cdiv(128, K), pl.cdiv(128, D))
    G = max(1, min(group, g_target))
    while G > 1 and num_patches % G != 0:
        G -= 1
    GK, GD = G * K, G * D
    R = (B * num_patches) // G                      # packed rows

    # Pack G consecutive frames per row: pure metadata reshape, no data move.
    frames = waveform.reshape(R, GK).astype(jnp.float32)

    # --- row-tile selection --------------------------------------------------
    out_bytes = jnp.dtype(out_dtype).itemsize
    bytes_per_row = GK * 4 + GD * out_bytes
    # Budget ~8 MiB for double-buffered input+output tiles (safe against the
    # v5e/v6e/v7x scoped-VMEM defaults; v7x has only 64 MiB physical).
    tm_vmem = max(8, ((8 * 1024 * 1024) // (2 * bytes_per_row)) // 8 * 8)
    tm = min(tm, tm_vmem)
    if R >= 16:
        # Big tiles amortize the ~0.35us/step overhead, but keep >= 2 parallel
        # grid steps so both v7x TensorCores get work.
        tm_eff = max(8, min(tm, (pl.cdiv(R, 2) // 8) * 8))
    else:
        tm_eff = R
    grid_m = pl.cdiv(R, tm_eff)
    R_pad = grid_m * tm_eff
    if R_pad != R:
        frames = jnp.pad(frames, ((0, R_pad - R), (0, 0)))

    # --- constant operands (resident in VMEM: constant index_map) -----------
    # Block-diagonal weight: one copy of W per packed frame; bf16 MXU path.
    w_bd = jnp.kron(jnp.eye(G, dtype=jnp.float32),
                    w.astype(jnp.float32)).astype(jnp.bfloat16)
    # Segment-sum (GD, G) and segment-broadcast (G, GD) matrices for the
    # per-frame LayerNorm done on the MXU.
    seg = jnp.kron(jnp.eye(G, dtype=jnp.float32), jnp.ones((D, 1), jnp.float32))
    segt = seg.T
    # Per-frame affine params tiled G times (broadcast folded in the wrapper).
    b_t = jnp.tile(b.astype(jnp.float32), G).reshape(1, GD)
    g_t = jnp.tile(gamma.astype(jnp.float32), G).reshape(1, GD)
    beta_t = jnp.tile(beta.astype(jnp.float32), G).reshape(1, GD)

    cost = pl.CostEstimate(
        flops=2 * R_pad * GK * GD            # main projection
        + 4 * R_pad * GD * G                 # segment sums (h, h*h)
        + 2 * R_pad * G * GD,                # segment broadcasts
        transcendentals=2 * R_pad * GD,      # gelu(tanh) + rsqrt
        bytes_accessed=R_pad * GK * 4 + R_pad * GD * out_bytes
        + GK * GD * 2 + 2 * GD * G * 4 + 3 * GD * 4,
    )

    kernel = functools.partial(_featurizer_kernel, d=D, eps=float(eps))

    out = pl.pallas_call(
        kernel,
        out_shape=jax.ShapeDtypeStruct((R_pad, GD), out_dtype),
        grid_spec=pltpu.PrefetchScalarGridSpec(
            num_scalar_prefetch=0,
            grid=(grid_m,),
            in_specs=[
                pl.BlockSpec((tm_eff, GK), lambda i: (i, 0)),
                pl.BlockSpec((GK, GD), lambda i: (0, 0)),
                pl.BlockSpec((1, GD), lambda i: (0, 0)),
                pl.BlockSpec((1, GD), lambda i: (0, 0)),
                pl.BlockSpec((1, GD), lambda i: (0, 0)),
                pl.BlockSpec((GD, G), lambda i: (0, 0)),
                pl.BlockSpec((G, GD), lambda i: (0, 0)),
            ],
            out_specs=pl.BlockSpec((tm_eff, GD), lambda i: (i, 0)),
        ),
        compiler_params=pltpu.CompilerParams(
            dimension_semantics=("parallel",),
        ),
        cost_estimate=cost,
    )(frames, w_bd, b_t, g_t, beta_t, seg, segt)

    # Row-major (R, G*D) == (R*G, D): contiguous unpack of the G frames / row.
    return out[:R].reshape(B, num_patches, D)


class SpeechBackboneJAX:
    """Concrete JAX/Pallas instantiation of the abstract SpeechBackbone."""

    def __init__(self, speech_backbone_id="synthetic-speech-v0",
                 speech_augmentation_strategy="none", sample_rate=16000,
                 frame_len=16, embed_dim=32, num_patches=128, seed=0):
        self.identifier = speech_backbone_id
        self.speech_augmentation_strategy = speech_augmentation_strategy
        self.sample_rate = sample_rate
        self._frame_len = frame_len
        self._embed_dim = embed_dim
        self._num_patches = num_patches

        # Deterministic synthetic parameters (Conv1d-as-matmul + LayerNorm).
        k0, k1 = jax.random.split(jax.random.PRNGKey(seed))
        scale = 1.0 / jnp.sqrt(jnp.float32(frame_len))
        self.w = jax.random.normal(k0, (frame_len, embed_dim), jnp.float32) * scale
        self.b = jax.random.normal(k1, (embed_dim,), jnp.float32) * 0.02
        self.gamma = jnp.ones((embed_dim,), jnp.float32)
        self.beta = jnp.zeros((embed_dim,), jnp.float32)

    # ---- forward: the featurizer hot path runs in the Pallas kernel ----
    def forward(self, input_ids):
        return speech_featurizer(
            input_ids, self.w, self.b, self.gamma, self.beta,
            frame_len=self._frame_len)

    __call__ = forward

    # ---- metadata properties from the abstract interface ----
    @property
    def default_image_resolution(self):
        return (1, self._num_patches, self._frame_len)

    @property
    def embed_dim(self):
        return self._embed_dim

    @property
    def num_patches(self):
        return self._num_patches

    @property
    def half_precision_dtype(self):
        return jnp.bfloat16

    def get_fsdp_wrapping_policy(self):
        # TODO(synk): FSDP wrapping policy is torch-distributed-specific; no
        # Pallas/JAX equivalent (sharding would be handled by jax.sharding).
        return None


def _reference(waveform, w, b, gamma, beta, frame_len, eps=1e-5):
    """Pure-JAX reference (matmul in the same bf16 precision as the kernel)."""
    B, T = waveform.shape
    P = T // frame_len
    x = waveform.reshape(B * P, frame_len)
    xb = x.astype(jnp.bfloat16).astype(jnp.float32)
    wb = w.astype(jnp.bfloat16).astype(jnp.float32)
    h = xb @ wb + b
    h = jax.nn.gelu(h, approximate=True)
    mean = h.mean(-1, keepdims=True)
    var = ((h - mean) ** 2).mean(-1, keepdims=True)
    h = (h - mean) * jax.lax.rsqrt(var + eps)
    h = h * gamma + beta
    return h.reshape(B, P, -1)


if __name__ == "__main__":
    backbone = SpeechBackboneJAX(frame_len=16, embed_dim=32, num_patches=128)

    B = 2
    T = backbone.num_patches * backbone._frame_len  # 128 * 16 = 2048 samples
    key = jax.random.PRNGKey(0)
    waveform = jax.random.normal(key, (B, T), jnp.float32)

    feats = backbone(waveform)
    jax.block_until_ready(feats)

    assert feats.shape == (B, backbone.num_patches, backbone.embed_dim)
    assert feats.dtype == backbone.half_precision_dtype
    assert jnp.all(jnp.isfinite(feats.astype(jnp.float32)))

    ref = _reference(waveform, backbone.w, backbone.b, backbone.gamma,
                     backbone.beta, backbone._frame_len)
    err = jnp.max(jnp.abs(feats.astype(jnp.float32) - ref))
    assert float(err) < 0.1, f"max abs err {float(err)}"

    print("KERNEL_OK")
</pallas_src>

<mosaic_0001>
module attributes {stable_mosaic.version = 11 : i64} {
  func.func @_featurizer_kernel(%arg0: i32, %arg1: memref<16x128xf32, #tpu.memory_space<vmem>>, %arg2: memref<128x256xbf16, #tpu.memory_space<vmem>>, %arg3: memref<1x256xf32, #tpu.memory_space<vmem>>, %arg4: memref<1x256xf32, #tpu.memory_space<vmem>>, %arg5: memref<1x256xf32, #tpu.memory_space<vmem>>, %arg6: memref<256x8xf32, #tpu.memory_space<vmem>>, %arg7: memref<8x256xf32, #tpu.memory_space<vmem>>, %arg8: memref<16x256xbf16, #tpu.memory_space<vmem>>) attributes {dimension_semantics = [#tpu.dimension_semantics<parallel>], iteration_bounds = array<i64: 2>, scalar_prefetch = 0 : i64, scratch_operands = 0 : i64, tpu.core_type = #tpu.core_type<tc>, window_params = [{transform_indices = @transform_0, window_bounds = array<i64: 16, 128>}, {pipeline_mode = #tpu.pipeline_mode<synchronous>, transform_indices = @transform_1, window_bounds = array<i64: 128, 256>}, {pipeline_mode = #tpu.pipeline_mode<synchronous>, transform_indices = @transform_2, window_bounds = array<i64: 1, 256>}, {pipeline_mode = #tpu.pipeline_mode<synchronous>, transform_indices = @transform_3, window_bounds = array<i64: 1, 256>}, {pipeline_mode = #tpu.pipeline_mode<synchronous>, transform_indices = @transform_4, window_bounds = array<i64: 1, 256>}, {pipeline_mode = #tpu.pipeline_mode<synchronous>, transform_indices = @transform_5, window_bounds = array<i64: 256, 8>}, {pipeline_mode = #tpu.pipeline_mode<synchronous>, transform_indices = @transform_6, window_bounds = array<i64: 8, 256>}, {transform_indices = @transform_7, window_bounds = array<i64: 16, 256>}]} {
    %c0 = arith.constant 0 : index
    %c0_0 = arith.constant 0 : index
    %0 = vector.load %arg1[%c0, %c0_0] : memref<16x128xf32, #tpu.memory_space<vmem>>, vector<16x128xf32>
    %c0_1 = arith.constant 0 : index
    %c0_2 = arith.constant 0 : index
    %1 = vector.load %arg2[%c0_1, %c0_2] : memref<128x256xbf16, #tpu.memory_space<vmem>>, vector<128x256xbf16>
    %2 = arith.truncf %0 : vector<16x128xf32> to vector<16x128xbf16>
    %cst = arith.constant dense<0.000000e+00> : vector<16x256xf32>
    %3 = tpu.matmul %2, %1, %cst {dimension_numbers = #tpu.dot_dimension_numbers<[1], [0], [0], [1], [0, 0, 1, 1], [], []>} : vector<16x128xbf16>, vector<128x256xbf16>, vector<16x256xf32> -> vector<16x256xf32>
    %c0_3 = arith.constant 0 : index
    %c0_4 = arith.constant 0 : index
    %4 = vector.load %arg3[%c0_3, %c0_4] : memref<1x256xf32, #tpu.memory_space<vmem>>, vector<1x256xf32>
    %5 = vector.broadcast %4 : vector<1x256xf32> to vector<16x256xf32>
    %6 = arith.addf %3, %5 : vector<16x256xf32>
    %7 = arith.mulf %6, %6 : vector<16x256xf32>
    %8 = arith.mulf %6, %7 : vector<16x256xf32>
    %cst_5 = arith.constant 4.471500e-02 : f32
    %9 = vector.broadcast %cst_5 : f32 to vector<16x256xf32>
    %10 = arith.mulf %9, %8 : vector<16x256xf32>
    %11 = arith.addf %6, %10 : vector<16x256xf32>
    %cst_6 = arith.constant 0.797884583 : f32
    %12 = vector.broadcast %cst_6 : f32 to vector<16x256xf32>
    %13 = arith.mulf %12, %11 : vector<16x256xf32>
    %14 = math.tanh %13 : vector<16x256xf32>
    %cst_7 = arith.constant 1.000000e+00 : f32
    %15 = vector.broadcast %cst_7 : f32 to vector<16x256xf32>
    %16 = arith.addf %15, %14 : vector<16x256xf32>
    %cst_8 = arith.constant 5.000000e-01 : f32
    %17 = vector.broadcast %cst_8 : f32 to vector<16x256xf32>
    %18 = arith.mulf %17, %16 : vector<16x256xf32>
    %19 = arith.mulf %6, %18 : vector<16x256xf32>
    %c0_9 = arith.constant 0 : index
    %c0_10 = arith.constant 0 : index
    %20 = vector.load %arg6[%c0_9, %c0_10] : memref<256x8xf32, #tpu.memory_space<vmem>>, vector<256x8xf32>
    %c0_11 = arith.constant 0 : index
    %c0_12 = arith.constant 0 : index
    %21 = vector.load %arg7[%c0_11, %c0_12] : memref<8x256xf32, #tpu.memory_space<vmem>>, vector<8x256xf32>
    %cst_13 = arith.constant dense<0.000000e+00> : vector<16x8xf32>
    %22 = tpu.matmul %19, %20, %cst_13 {dimension_numbers = #tpu.dot_dimension_numbers<[1], [0], [0], [1], [0, 0, 1, 1], [], []>} : vector<16x256xf32>, vector<256x8xf32>, vector<16x8xf32> -> vector<16x8xf32>
    %cst_14 = arith.constant 3.125000e-02 : f32
    %23 = vector.broadcast %cst_14 : f32 to vector<16x8xf32>
    %24 = arith.mulf %22, %23 : vector<16x8xf32>
    %25 = arith.mulf %19, %19 : vector<16x256xf32>
    %cst_15 = arith.constant dense<0.000000e+00> : vector<16x8xf32>
    %26 = tpu.matmul %25, %20, %cst_15 {dimension_numbers = #tpu.dot_dimension_numbers<[1], [0], [0], [1], [0, 0, 1, 1], [], []>} : vector<16x256xf32>, vector<256x8xf32>, vector<16x8xf32> -> vector<16x8xf32>
    %cst_16 = arith.constant 3.125000e-02 : f32
    %27 = vector.broadcast %cst_16 : f32 to vector<16x8xf32>
    %28 = arith.mulf %26, %27 : vector<16x8xf32>
    %29 = arith.mulf %24, %24 : vector<16x8xf32>
    %30 = arith.subf %28, %29 : vector<16x8xf32>
    %cst_17 = arith.constant 9.99999974E-6 : f32
    %31 = vector.broadcast %cst_17 : f32 to vector<16x8xf32>
    %32 = arith.addf %30, %31 : vector<16x8xf32>
    %33 = math.rsqrt %32 : vector<16x8xf32>
    %cst_18 = arith.constant dense<0.000000e+00> : vector<16x256xf32>
    %34 = tpu.matmul %24, %21, %cst_18 {dimension_numbers = #tpu.dot_dimension_numbers<[1], [0], [0], [1], [0, 0, 1, 1], [], []>} : vector<16x8xf32>, vector<8x256xf32>, vector<16x256xf32> -> vector<16x256xf32>
    %cst_19 = arith.constant dense<0.000000e+00> : vector<16x256xf32>
    %35 = tpu.matmul %33, %21, %cst_19 {dimension_numbers = #tpu.dot_dimension_numbers<[1], [0], [0], [1], [0, 0, 1, 1], [], []>} : vector<16x8xf32>, vector<8x256xf32>, vector<16x256xf32> -> vector<16x256xf32>
    %36 = arith.subf %19, %34 : vector<16x256xf32>
    %37 = arith.mulf %36, %35 : vector<16x256xf32>
    %c0_20 = arith.constant 0 : index
    %c0_21 = arith.constant 0 : index
    %38 = vector.load %arg4[%c0_20, %c0_21] : memref<1x256xf32, #tpu.memory_space<vmem>>, vector<1x256xf32>
    %39 = vector.broadcast %38 : vector<1x256xf32> to vector<16x256xf32>
    %40 = arith.mulf %37, %39 : vector<16x256xf32>
    %c0_22 = arith.constant 0 : index
    %c0_23 = arith.constant 0 : index
    %41 = vector.load %arg5[%c0_22, %c0_23] : memref<1x256xf32, #tpu.memory_space<vmem>>, vector<1x256xf32>
    %42 = vector.broadcast %41 : vector<1x256xf32> to vector<16x256xf32>
    %43 = arith.addf %40, %42 : vector<16x256xf32>
    %44 = arith.truncf %43 : vector<16x256xf32> to vector<16x256xbf16>
    %c0_24 = arith.constant 0 : index
    %c0_25 = arith.constant 0 : index
    %45 = vector.load %arg8[%c0_24, %c0_25] : memref<16x256xbf16, #tpu.memory_space<vmem>>, vector<16x256xbf16>
    tpu.vector_store %arg8[%c0_24, %c0_25], %44 {strides = array<i32>} : memref<16x256xbf16, #tpu.memory_space<vmem>>, vector<16x256xbf16>,
    return
  }
  func.func @transform_0(%arg0: i32) -> (i32, i32) {
    %c0_i32 = arith.constant 0 : i32
    %c0_i32_0 = arith.constant 0 : i32
    return %arg0, %c0_i32 : i32, i32
  }
  func.func @transform_1(%arg0: i32) -> (i32, i32) {
    %c0_i32 = arith.constant 0 : i32
    %c0_i32_0 = arith.constant 0 : i32
    %c0_i32_1 = arith.constant 0 : i32
    return %c0_i32, %c0_i32_0 : i32, i32
  }
  func.func @transform_2(%arg0: i32) -> (i32, i32) {
    %c0_i32 = arith.constant 0 : i32
    %c0_i32_0 = arith.constant 0 : i32
    %c0_i32_1 = arith.constant 0 : i32
    return %c0_i32, %c0_i32_0 : i32, i32
  }
  func.func @transform_3(%arg0: i32) -> (i32, i32) {
    %c0_i32 = arith.constant 0 : i32
    %c0_i32_0 = arith.constant 0 : i32
    %c0_i32_1 = arith.constant 0 : i32
    return %c0_i32, %c0_i32_0 : i32, i32
  }
  func.func @transform_4(%arg0: i32) -> (i32, i32) {
    %c0_i32 = arith.constant 0 : i32
    %c0_i32_0 = arith.constant 0 : i32
    %c0_i32_1 = arith.constant 0 : i32
    return %c0_i32, %c0_i32_0 : i32, i32
  }
  func.func @transform_5(%arg0: i32) -> (i32, i32) {
    %c0_i32 = arith.constant 0 : i32
    %c0_i32_0 = arith.constant 0 : i32
    %c0_i32_1 = arith.constant 0 : i32
    return %c0_i32, %c0_i32_0 : i32, i32
  }
  func.func @transform_6(%arg0: i32) -> (i32, i32) {
    %c0_i32 = arith.constant 0 : i32
    %c0_i32_0 = arith.constant 0 : i32
    %c0_i32_1 = arith.constant 0 : i32
    return %c0_i32, %c0_i32_0 : i32, i32
  }
  func.func @transform_7(%arg0: i32) -> (i32, i32) {
    %c0_i32 = arith.constant 0 : i32
    %c0_i32_0 = arith.constant 0 : i32
    return %arg0, %c0_i32 : i32, i32
  }
}

</mosaic_0001>

<bundles_post_ra>
// kernel: tpu_custom_call.1
= control target key start
LH: loop header
LB: loop body
LE: loop exit
PB: predicated region body
PF: predicated region fallthrough
CT: control target
= control target key end

     0   :  { %12 = vsyncpa [#allocation3], 0  ;;  %s1635_s0 = inlined_call_operand.vmem [shape: f32[32,128], index: 0, kind: input, shape index: {}]   ;;  %s1636_s1 = inlined_call_operand.vmem [shape: bf16[128,256], index: 1, kind: input, shape index: {}]   ;;  %s1637_s2 = inlined_call_operand.vmem [shape: f32[1,256], index: 2, kind: input, shape index: {}]   ;;  %s1638_s3 = inlined_call_operand.vmem [shape: f32[1,256], index: 3, kind: input, shape index: {}]   ;;  %s1639_s4 = inlined_call_operand.vmem [shape: f32[1,256], index: 4, kind: input, shape index: {}]   ;;  %s1640_s5 = inlined_call_operand.vmem [shape: f32[256,8], index: 5, kind: input, shape index: {}]   ;;  %s1641_s6 = inlined_call_operand.vmem [shape: f32[8,256], index: 6, kind: input, shape index: {}]   ;;  %s1642_s7 = inlined_call_operand.hbm [shape: bf16[32,256], index: 7, kind: output, shape index: {}]  }
   0x1   :  { %14 = vsyncpa [#allocation3 + $0x1], 0  ;;  %s1336_s24 = smov 0   ;;  %s1338_s25 = smov 0  }
   0x2   :  { %s1340_s26 = smov 0   ;;  %s1342_s27 = smov 0  }
   0x3 LB: > { %s1357_s28 = sadd.s32 4294967295, %s1289_s27   ;;  %s969_s29 = sadd.s32 4294967294, %s1289_s27   ;;  %s1289_s27 = sphi %s1342_s27, %s1648_s27   ;;  %s1285_s26 = sphi %s1340_s26, %s1647_s26   ;;  %s1281_s25 = sphi %s1338_s25, %s1646_s25   ;;  %s1277_s24 = sphi %s1336_s24, %s1645_s24  }
   0x4   : > { %s1361_s30 = sadd.s32 1, %s1289_s27   ;;  %s179_s8 = sadd.s32 1, %s1285_s26 }
   0x5   : > { %s176_s9 = ssub.s32 %s1289_s27, %s1361_s30  ;;  %p189_p0 = scmp.ne.s32.totalorder %s1285_s26, %s1281_s25 }
   0x6   : > { %p177_p1 = scmp.eq.s32.totalorder %s176_s9, 0  ;;  %p190_p2 = scmp.eq.s32.totalorder %s1357_s28, 1 }
   0x7   : > { %p195_p3 = scmp.ne.s32.totalorder %s1281_s25, %s1277_s24  ;;  %p196_p4 = scmp.eq.s32.totalorder %s969_s29, 1 }
   0x8   : > { %s1372_s10 = scalar_select %p177_p1, %s1285_s26, %s179_s8  }
   0x9   : > { %p1374_p5 = por %p190_p2, %p189_p0  ;;  %p1378_p6 = por %p196_p4, %p195_p3 }
   0xa   : > { %p972_p7 = scmp.ge.s32.totalorder %s1289_s27, 1  ;;  %p241_p8 = scmp.lt.s32.totalorder %s1289_s27, 3 }
   0xc   : > { %p242_p9 = pnand %p972_p7, %p241_p8 }
   0xd   : > { %v1191_v0 = vld [vmem:[%s1636_s1 + $0x4] ss:$8 sps:$4 sm:$0xff] (!%p242_p9)   ;;  %v1193_v1 = vld [vmem:[%s1636_s1] ss:$8 sps:$4 sm:$0xff] (!%p242_p9)   ;;  %v1291_v2 = vmov (!%p242_p9), 0   ;;  %s974_s13 = sshll.u32 (!%p242_p9), %s1357_s28, 1 }
   0xe   : > { %245 = sbr.rel (%p242_p9) target bundleno = 763 (0x2fb), region = 48  ;;  %424 = vmatprep.mubr.bf16.mxu0 (!%p242_p9), %v1291_v2  ;;  %392 = vmatprep.subr.bf16.mxu0 (!%p242_p9), %v1191_v0  ;;  %v1194_v3 = vld [vmem:[%s1636_s1 + $0x14] ss:$8 sps:$4 sm:$0xff] (!%p242_p9)   ;;  %v1196_v4 = vld [vmem:[%s1636_s1 + $0x10] ss:$8 sps:$4 sm:$0xff] (!%p242_p9)   ;;  %p274_p10 = scmp.lt.s32.totalorder (!%p242_p9), %s974_s13, 3 }
   0xf   : > { %393 = vmatpush1.bf16.msra.mxu0 (!%p242_p9), %v1193_v1  ;;  %v1197_v5 = vld [vmem:[%s1636_s1 + $0x24] ss:$8 sps:$4 sm:$0xff] (!%p242_p9)   ;;  %v1199_v6 = vld [vmem:[%s1636_s1 + $0x20] ss:$8 sps:$4 sm:$0xff] (!%p242_p9)   ;;  %v1200_v7 = vld [vmem:[%s1636_s1 + $0x34] ss:$8 sps:$4 sm:$0xff] (!%p242_p9)  }
  0x10   : > { %394 = vmatprep.subr.bf16.mxu0 (!%p242_p9), %v1194_v3  ;;  %v1202_v8 = vld [vmem:[%s1636_s1 + $0x30] ss:$8 sps:$4 sm:$0xff] (!%p242_p9)   ;;  %v1203_v9 = vld [vmem:[%s1636_s1 + $0x44] ss:$8 sps:$4 sm:$0xff] (!%p242_p9)   ;;  %v1205_v10 = vld [vmem:[%s1636_s1 + $0x40] ss:$8 sps:$4 sm:$0xff] (!%p242_p9)  }
  0x11   : > { %v1206_v11 = vld [vmem:[%s1636_s1 + $0x54] ss:$8 sps:$4 sm:$0xff] (!%p242_p9)   ;;  %v1208_v12 = vld [vmem:[%s1636_s1 + $0x50] ss:$8 sps:$4 sm:$0xff] (!%p242_p9)   ;;  %v1209_v13 = vld [vmem:[%s1636_s1 + $0x64] ss:$8 sps:$4 sm:$0xff] (!%p242_p9)  }
  0x12   : > { %v1211_v14 = vld [vmem:[%s1636_s1 + $0x60] ss:$8 sps:$4 sm:$0xff] (!%p242_p9)   ;;  %v1212_v15 = vld [vmem:[%s1636_s1 + $0x74] ss:$8 sps:$4 sm:$0xff] (!%p242_p9)   ;;  %v1214_v16 = vld [vmem:[%s1636_s1 + $0x70] ss:$8 sps:$4 sm:$0xff] (!%p242_p9)  }
  0x13   : > { %395 = vmatpush1.bf16.msra.mxu0 (!%p242_p9), %v1196_v4  ;;  %v487_v20 = vld [vmem:[%s1640_s5 + $0x80] sm:$0xff] (!%p242_p9)  ;;  %v488_v21 = vld [vmem:[%s1640_s5 + $0x88] sm:$0xff] (!%p242_p9)  ;;  %v489_v26 = vld [vmem:[%s1640_s5 + $0x90] sm:$0xff] (!%p242_p9)  ;;  %v302_v4 = vlaneseq (!%p242_p9)  ;;  %vm671_vm0 = vcmask (!%p242_p9), 64512   ;;  %s1007_s15 = sshll.u32 (!%p242_p9), %s1357_s28, 8  ;;  %s1293_s22 = smov (!%p242_p9), [#allocation2]  }
  0x14   : > { %396 = vmatprep.subr.bf16.mxu0 (!%p242_p9), %v1197_v5  ;;  %v1084_v22 = vpack.c.bf16 (!%p242_p9), %v488_v21, %v487_v20  ;;  %v471_v23 = vld [vmem:[%s1640_s5] sm:$0xff] (!%p242_p9)  ;;  %v472_v24 = vld [vmem:[%s1640_s5 + $0x8] sm:$0xff] (!%p242_p9)  ;;  %v490_v27 = vld [vmem:[%s1640_s5 + $0x98] sm:$0xff] (!%p242_p9) }
  0x15   : > { %s1650_s13 = smov (!%p274_p10, %s974_s13), 3  ;;  %v1086_v25 = vpack.c.bf16 %v472_v24, %v471_v23  ;;  %v1088_v28 = vpack.c.bf16 %v490_v27, %v489_v26  ;;  %v473_v29 = vld [vmem:[%s1640_s5 + $0x10] sm:$0xff]  ;;  %v474_v30 = vld [vmem:[%s1640_s5 + $0x18] sm:$0xff]  ;;  %v491_v32 = vld [vmem:[%s1640_s5 + $0xa0] sm:$0xff]  ;;  %v303_v5 = vshrl.u32 %v302_v4, 7 }
  0x16   : > { %s975_s9 = sshll.u32 %s1650_s13, 3  ;;  %1085 = vmatprep.subr.bf16.mxu1 %v1084_v22  ;;  %v1090_v31 = vpack.c.bf16 %v474_v30, %v473_v29  ;;  %v492_v33 = vld [vmem:[%s1640_s5 + $0xa8] sm:$0xff]  ;;  %v475_v35 = vld [vmem:[%s1640_s5 + $0x20] sm:$0xff]  ;;  %v493_v38 = vld [vmem:[%s1640_s5 + $0xb0] sm:$0xff]  ;;  %s1231_s13 = sshll.u32 %s1293_s22, 4  ;;  %s1232_s13 = int_to_ptr.vmem [resolvable:$false] %s1231_s13 }
  0x17   : > { %397 = vmatpush1.bf16.msra.mxu0 %v1199_v6  ;;  %s277_s20 = scalar_lea.vmem %s1635_s0, %s975_s9  ;;  %1087 = vmatpush3.bf16.msra.mxu1 %v1086_v25  ;;  %v1092_v34 = vpack.c.bf16 %v492_v33, %v491_v32  ;;  %v476_v36 = vld [vmem:[%s1640_s5 + $0x28] sm:$0xff]  ;;  %v494_v39 = vld [vmem:[%s1640_s5 + $0xb8] sm:$0xff]  ;;  %v477_v41 = vld [vmem:[%s1640_s5 + $0x30] sm:$0xff]  ;;  %v1532_v6 = vsub.s32 0, %v303_v5  ;;  %s270_s9 = sand.u32 1, %s1281_s25  }
  0x18   : > { %398 = vmatprep.subr.bf16.mxu0 %v1200_v7  ;;  %v281_v17 = vld [vmem:[%s277_s20] sm:$0xff]  ;;  %v282_v18 = vld [vmem:[%s277_s20 + $0x8] sm:$0xff]  ;;  %1089 = vmatprep.subr.bf16.mxu1 %v1088_v28  ;;  %v1094_v37 = vpack.c.bf16 %v476_v36, %v475_v35  ;;  %v1096_v40 = vpack.c.bf16 %v494_v39, %v493_v38  ;;  %v478_v42 = vld [vmem:[%s1640_s5 + $0x38] sm:$0xff]  ;;  %s973_s14 = sshll.u32 %s270_s9, 4  ;;  %s1590_s20 = scalar_lea.hbm %s1642_s7, %s1007_s15 }
  0x19   : > { %v299_v19 = vpack.c.bf16 %v282_v18, %v281_v17  ;;  %v1098_v43 = vpack.c.bf16 %v478_v42, %v477_v41  ;;  %v495_v44 = vld [vmem:[%s1640_s5 + $0xc0] sm:$0xff]  ;;  %v496_v45 = vld [vmem:[%s1640_s5 + $0xc8] sm:$0xff]  ;;  %v497_v49 = vld [vmem:[%s1640_s5 + $0xd0] sm:$0xff]  ;;  %s272_s16 = scalar_lea.vmem [#allocation2], %s973_s14  ;;  %s1594_s21 = scalar_lea.sflag [#allocation3], %s270_s9 }
  0x1a   : > { %v1100_v46 = vpack.c.bf16 %v496_v45, %v495_v44  ;;  %v479_v47 = vld [vmem:[%s1640_s5 + $0x40] sm:$0xff]  ;;  %v480_v48 = vld [vmem:[%s1640_s5 + $0x48] sm:$0xff]  ;;  %v498_v51 = vld [vmem:[%s1640_s5 + $0xd8] sm:$0xff]  ;;  %s907_s17 = sshll.u32 %s272_s16, 4  ;;  %s1233_s23 = scalar_lea.vmem %s1232_s13, 512  ;;  %s1592_s17 = int_to_ptr.vmem [resolvable:$true] %s907_s17 }
  0x1b   : > { %399 = vmatpush1.bf16.msra.mxu0 %v1202_v8  ;;  %1091 = vmatpush3.bf16.msra.mxu1 %v1090_v31  ;;  %v1102_v50 = vpack.c.bf16 %v480_v48, %v479_v47  ;;  %v481_v52 = vld [vmem:[%s1640_s5 + $0x50] sm:$0xff]  ;;  %v482_v53 = vld [vmem:[%s1640_s5 + $0x58] sm:$0xff]  ;;  %v1104_v54 = vpack.c.bf16 %v498_v51, %v497_v49  ;;  %v499_v55 = vld [vmem:[%s1640_s5 + $0xe0] sm:$0xff]  ;;  %v1537_v8 = vsub.s32 1, %v303_v5  ;;  %s1227_s28 = scalar_lea.vmem %s1592_s17, 256  ;;  %p1234_p0 = scmp.lt.s32.totalorder %s1592_s17, %s1232_s13 }
  0x1c   : > { %400 = vmatprep.subr.bf16.mxu0 %v1203_v9  ;;  %1093 = vmatprep.subr.bf16.mxu1 %v1092_v34  ;;  %v500_v56 = vld [vmem:[%s1640_s5 + $0xe8] sm:$0xff]  ;;  %v1106_v57 = vpack.c.bf16 %v482_v53, %v481_v52  ;;  %v483_v59 = vld [vmem:[%s1640_s5 + $0x60] sm:$0xff]  ;;  %v501_v61 = vld [vmem:[%s1640_s5 + $0xf0] sm:$0xff]  ;;  %p1228_p11 = scmp.ne.s32.totalorder %s1592_s17, %s1227_s28  ;;  %p1235_p1 = scmp.lt.s32.totalorder %s1233_s23, %s1227_s28 }
  0x1d   : > { %v1108_v58 = vpack.c.bf16 %v500_v56, %v499_v55  ;;  %v484_v60 = vld [vmem:[%s1640_s5 + $0x68] sm:$0xff]  ;;  %v502_v62 = vld [vmem:[%s1640_s5 + $0xf8] sm:$0xff]  ;;  %v485_v1 = vld [vmem:[%s1640_s5 + $0x70] sm:$0xff] }
  0x1e   : > { %v1110_v63 = vpack.c.bf16 %v484_v60, %v483_v59  ;;  %v1112_v0 = vpack.c.bf16 %v502_v62, %v501_v61  ;;  %v486_v2 = vld [vmem:[%s1640_s5 + $0x78] sm:$0xff]  ;;  %v300_v7 = vld [vmem:[%s1637_s2] sm:$0x3]  ;;  %v504_v59 = vld [vmem:[%s1641_s6 + $0x8] sm:$0xff]  ;;  %v1292_v61 = vmov 0.0   ;;  %p1229_p12 = pnand %p1228_p11, %p1374_p5  ;;  %p1236_p2 = por %p1235_p1, %p1234_p0 }
  0x1f   : > { %401 = vmatpush1.bf16.msra.mxu0 %v1205_v10  ;;  %1095 = vmatpush3.bf16.msra.mxu1 %v1094_v37  ;;  %v1114_v3 = vpack.c.bf16 %v486_v2, %v485_v1  ;;  %v305_v9 = vrot.slane %v300_v7, %v1532_v6  ;;  %v309_v10 = vrot.slane %v300_v7, %v1537_v8  ;;  %v503_v60 = vld [vmem:[%s1641_s6] sm:$0xff] }
  0x20   : > { %402 = vmatprep.subr.bf16.mxu0 %v1206_v11  ;;  %1097 = vmatprep.subr.bf16.mxu1 %v1096_v40  ;;  %p1230_p13 = pneg %p1229_p12 }
  0x22   : > { %p1237_p3 = pnand %p1236_p2, %p1230_p13 }
  0x23   : > { %403 = vmatpush1.bf16.msra.mxu0 %v1208_v12  ;;  %1099 = vmatpush3.bf16.msra.mxu1 %v1098_v43 }
  0x24   : > { %404 = vmatprep.subr.bf16.mxu0 %v1209_v13  ;;  %1101 = vmatprep.subr.bf16.mxu1 %v1100_v46 }
  0x27   : > { %405 = vmatpush1.bf16.msra.mxu0 %v1211_v14  ;;  %1103 = vmatpush3.bf16.msra.mxu1 %v1102_v50 }
  0x28   : > { %406 = vmatprep.subr.bf16.mxu0 %v1212_v15  ;;  %1105 = vmatprep.subr.bf16.mxu1 %v1104_v54 }
  0x2b   : > { %407 = vmatpush1.bf16.msra.mxu0 %v1214_v16  ;;  %1107 = vmatpush3.bf16.msra.mxu1 %v1106_v57 }
  0x2c   : > { %1117 = vmatprep.subr.bf16.mxu0 %v1084_v22  ;;  %1109 = vmatprep.subr.bf16.mxu1 %v1108_v58 }
  0x2e   : > { %425 = vmatmul.mubr.bf16.vlgmr.msra.gmra.mrb[0].mxu0 %v299_v19 }
  0x2f   : > { %1119 = vmatpush3.bf16.msra.mxu0 %v1086_v25  ;;  %1111 = vmatpush3.bf16.msra.mxu1 %v1110_v63 }
  0x30   : > { %1121 = vmatprep.subr.bf16.mxu0 %v1088_v28  ;;  %1113 = vmatprep.subr.bf16.mxu1 %v1112_v0 }
  0x33   : > { %1123 = vmatpush3.bf16.msra.mxu0 %v1090_v31  ;;  %1115 = vmatpush3.bf16.msra.mxu1 %v1114_v3 }
  0x34   : > { %1125 = vmatprep.subr.bf16.mxu0 %v1092_v34  ;;  %678 = vmatprep.subr.mxu1 %v504_v59 }
  0x37   : > { %1127 = vmatpush3.bf16.msra.mxu0 %v1094_v37 }
  0x38   : > { %1129 = vmatprep.subr.bf16.mxu0 %v1096_v40 }
  0x3b   : > { %1131 = vmatpush3.bf16.msra.mxu0 %v1098_v43 }
  0x3c   : > { %1133 = vmatprep.subr.bf16.mxu0 %v1100_v46 }
  0x3f   : > { %1135 = vmatpush3.bf16.msra.mxu0 %v1102_v50 }
  0x40   : > { %1137 = vmatprep.subr.bf16.mxu0 %v1104_v54 }
  0x43   : > { %1139 = vmatpush3.bf16.msra.mxu0 %v1106_v57 }
  0x44   : > { %1141 = vmatprep.subr.bf16.mxu0 %v1108_v58 }
  0x47   : > { %1143 = vmatpush3.bf16.msra.mxu0 %v1110_v63 }
  0x48   : > { %1145 = vmatprep.subr.bf16.mxu0 %v1112_v0 }
  0x4b   : > { %1147 = vmatpush3.bf16.msra.mxu0 %v1114_v3 }
 0x101   : > { %v426_v11 = vpop.f32.mrb[0].mxu0 }
 0x102   : > { %v427_v12 = vadd.f32 %v426_v11, %v305_v9  ;;  %v428_v13 = vpop.f32.mrb[1].mxu0 }
 0x103   : > { %v429_v14 = vadd.f32 %v428_v13, %v309_v10  ;;  %v430_v15 = vpop.f32.mrb[2].mxu0 }
 0x104   : > { %v435_v16 = vmul.f32 %v427_v12, %v427_v12  ;;  %v431_v17 = vadd.f32 %v430_v15, %v305_v9  ;;  %v432_v18 = vpop.f32.mrb[3].mxu0 }
 0x105   : > { %v436_v19 = vmul.f32 %v429_v14, %v429_v14  ;;  %v433_v20 = vadd.f32 %v432_v18, %v309_v10 }
 0x106   : > { %v439_v21 = vmul.f32 %v435_v16, %v427_v12  ;;  %v437_v22 = vmul.f32 %v431_v17, %v431_v17 }
 0x107   : > { %v440_v23 = vmul.f32 %v436_v19, %v429_v14  ;;  %v438_v24 = vmul.f32 %v433_v20, %v433_v20 }
 0x108   : > { %v443_v25 = vmul.f32 0.044715, %v439_v21  ;;  %v441_v26 = vmul.f32 %v437_v22, %v431_v17 }
 0x109   : > { %v444_v27 = vmul.f32 0.044715, %v440_v23  ;;  %v442_v28 = vmul.f32 %v438_v24, %v433_v20 }
 0x10a   : > { %v447_v29 = vadd.f32 %v443_v25, %v427_v12  ;;  %v445_v30 = vmul.f32 0.044715, %v441_v26 }
 0x10b   : > { %v448_v31 = vadd.f32 %v444_v27, %v429_v14  ;;  %v446_v32 = vmul.f32 0.044715, %v442_v28  ;;  %v846_v28 = vld [vmem:[%s1638_s3] sm:$0x3] }
 0x10c   : > { %v451_v33 = vmul.f32 0.7978846, %v447_v29  ;;  %v449_v34 = vadd.f32 %v445_v30, %v431_v17  ;;  %v862_v29 = vld [vmem:[%s1639_s4] sm:$0x3] }
 0x10d   : > { %v452_v35 = vmul.f32 0.7978846, %v448_v31  ;;  %v450_v36 = vadd.f32 %v446_v32, %v433_v20  ;;  %v851_v31 = vrot.slane %v846_v28, %v1532_v6 }
 0x10e   : > { %v453_v37 = vmul.f32 0.7978846, %v449_v34  ;;  %1215 = vtanh.f32 %v451_v33  ;;  %v855_v34 = vrot.slane %v846_v28, %v1537_v8 }
 0x10f   : > { %v454_v38 = vmul.f32 0.7978846, %v450_v36  ;;  %1217 = vtanh.f32 %v452_v35  ;;  %v867_v36 = vrot.slane %v862_v29, %v1532_v6 }
 0x110   : > { %1219 = vtanh.f32 %v453_v37 }
 0x111   : > { %1221 = vtanh.f32 %v454_v38 }
 0x118   : > { %v1216_v39 = vpop.eup %1215 }
 0x119   : > { %v1218_v40 = vpop.eup %1217  ;;  %v459_v41 = vadd.f32 1.0, %v1216_v39  ;;  %v871_v39 = vrot.slane %v862_v29, %v1537_v8 }
 0x11a   : > { %v1220_v42 = vpop.eup %1219  ;;  %v460_v43 = vadd.f32 1.0, %v1218_v40 }
 0x11b   : > { %v1222_v44 = vpop.eup %1221  ;;  %v463_v45 = vmul.f32 0.5, %v459_v41  ;;  %v461_v46 = vadd.f32 1.0, %v1220_v42 }
 0x11c   : > { %v464_v47 = vmul.f32 0.5, %v460_v43  ;;  %v462_v48 = vadd.f32 1.0, %v1222_v44 }
 0x11d   : > { %v1541_v49 = vmul.f32 %v463_v45, %v427_v12  ;;  %v465_v50 = vmul.f32 0.5, %v461_v46 }
 0x11e   : > { %v1543_v51 = vmul.f32 %v464_v47, %v429_v14  ;;  %v466_v52 = vmul.f32 0.5, %v462_v48 }
 0x11f   : > { %v582_v55 = vmul.f32 %v1541_v49, %v1541_v49  ;;  %v1553_v56 = vmul.f32 %v465_v50, %v431_v17 }
 0x120   : > { %569 = vmatprep.mubr.f32.mxu1 %v1543_v51  ;;  %v1546_v53 = vmul.f32 %v466_v52, %v433_v20  ;;  %v583_v54 = vmul.f32 %v1543_v51, %v1543_v51 }
 0x121   : > { %570 = vmatmul.mubr.f32.vlgmr.msra.gmra.mrb[0].mxu1 %v1541_v49  ;;  %v584_v58 = vmul.f32 %v1553_v56, %v1553_v56 }
 0x122   : > { %574 = vmatprep.mubr.f32.mxu1 %v1546_v53  ;;  %650 = vmatprep.mubr.f32.mxu0 %v583_v54  ;;  %v585_v57 = vmul.f32 %v1546_v53, %v1546_v53 }
 0x123   : > { %651 = vmatmul.mubr.f32.vlgmr.msra.gmra.mrb[4].mxu0 %v582_v55  ;;  %679 = vmatpush1.msra.mxu1 %v503_v60 }
 0x124   : > { %655 = vmatprep.mubr.f32.mxu0 %v585_v57  ;;  %761 = vmatprep.subr.mxu1 %v504_v59 }
 0x125   : > { %575 = vmatmul.mubr.f32.gmra.mrb[2].mxu1 %v1553_v56 }
 0x126   : > { %742 = vmatprep.mubr.f32.mxu1 %v1292_v61 }
 0x127   : > { %656 = vmatmul.mubr.f32.gmra.mrb[6].mxu0 %v584_v58 }
 0x1f4   : > { %v1040_v62 = vpop.f32.mrb[0].mxu1 }
 0x1f5   : > { %v1041_v63 = vpop.f32.mrb[1].mxu1 }
 0x1f6   : > { %v1042_v0 = vadd.f32 %v1041_v63, %v1040_v62  ;;  %v1078_v1 = vpop.f32.mrb[4].mxu0 }
 0x1f7   : > { %v1079_v2 = vpop.f32.mrb[5].mxu0 }
 0x1f8   : > { %v580_v3 = vmul.f32 0.03125, %v1042_v0  ;;  %v1080_v4 = vadd.f32 %v1079_v2, %v1078_v1  ;;  %v1043_v5 = vpop.f32.mrb[2].mxu1 }
 0x1f9   : > { %v1044_v7 = vpop.f32.mrb[3].mxu1 }
 0x1fa   : > { %v663_v9 = vmul.f32 %v580_v3, %v580_v3  ;;  %v661_v10 = vmul.f32 0.03125, %v1080_v4  ;;  %v1045_v11 = vadd.f32 %v1044_v7, %v1043_v5  ;;  %v1081_v12 = vpop.f32.mrb[6].mxu0  ;;  %992 = vmatmul.mubr.msk.f32.vlgmr.msra.gmra.mrb[4].mxu1 %vm671_vm0, %v580_v3 }
 0x1fb   : > { %v1082_v13 = vpop.f32.mrb[7].mxu0  ;;  %748 = vmatprep.mubr.f32.mxu1 %v1292_v61  ;;  %762 = vmatpush1.msra.mxu1 %v503_v60 }
 0x1fc   : > { %v665_v14 = vsub.f32 %v661_v10, %v663_v9  ;;  %v581_v15 = vmul.f32 0.03125, %v1045_v11  ;;  %v1083_v16 = vadd.f32 %v1082_v13, %v1081_v12 }
 0x1fe   : > { %v667_v17 = vadd.f32 1e-05, %v665_v14  ;;  %v664_v18 = vmul.f32 %v581_v15, %v581_v15  ;;  %v662_v19 = vmul.f32 0.03125, %v1083_v16  ;;  %993 = vmatmul.mubr.msk.f32.gmra.mrb[6].mxu1 %vm671_vm0, %v581_v15 }
 0x1ff   : > { %825 = vmatprep.mubr.f32.mxu1 %v1292_v61 }
 0x200   : > { %1223 = vrsqrt.f32 %v667_v17  ;;  %v666_v20 = vsub.f32 %v662_v19, %v664_v18 }
 0x202   : > { %v668_v21 = vadd.f32 1e-05, %v666_v20 }
 0x204   : > { %1225 = vrsqrt.f32 %v668_v21 }
 0x20a   : > { %v1224_v22 = vpop.eup %1223 }
 0x20b   : > { %994 = vmatmul.mubr.msk.f32.vlgmr.msra.gmra.mrb[8].mxu1 %vm671_vm0, %v1224_v22 }
 0x20c   : > { %831 = vmatprep.mubr.f32.mxu1 %v1292_v61 }
 0x20e   : > { %v1226_v23 = vpop.eup %1225 }
 0x20f   : > { %995 = vmatmul.mubr.msk.f32.gmra.mrb[10].mxu1 %vm671_vm0, %v1226_v23 }
 0x2cd   : > { %v744_v24 = vpop.f32.mrb[4].mxu1 }
 0x2ce   : > { %v746_v25 = vpop.f32.mrb[5].mxu1  ;;  %v838_v30 = vsub.f32 %v1541_v49, %v744_v24 }
 0x2cf   : > { %v839_v32 = vsub.f32 %v1543_v51, %v746_v25 }
 0x2d1   : > { %v750_v26 = vpop.f32.mrb[6].mxu1 }
 0x2d2   : > { %v752_v27 = vpop.f32.mrb[7].mxu1  ;;  %v840_v40 = vsub.f32 %v1553_v56, %v750_v26 }
 0x2d3   : > { %v841_v42 = vsub.f32 %v1546_v53, %v752_v27 }
 0x2de   : > { %v827_v33 = vpop.f32.mrb[8].mxu1 }
 0x2df   : > { %v842_v35 = vmul.f32 %v838_v30, %v827_v33  ;;  %v829_v37 = vpop.f32.mrb[9].mxu1 }
 0x2e0   : > { %v843_v38 = vmul.f32 %v839_v32, %v829_v37 }
 0x2e1   : > { %v858_v41 = vmul.f32 %v851_v31, %v842_v35 }
 0x2e2   : > { %v859_v43 = vmul.f32 %v855_v34, %v843_v38  ;;  %v833_v44 = vpop.f32.mrb[10].mxu1 }
 0x2e3   : > { %v874_v45 = vadd.f32 %v867_v36, %v858_v41  ;;  %v844_v46 = vmul.f32 %v840_v40, %v833_v44  ;;  %v835_v47 = vpop.f32.mrb[11].mxu1 }
 0x2e4   : > { %v875_v48 = vadd.f32 %v871_v39, %v859_v43  ;;  %v845_v49 = vmul.f32 %v841_v42, %v835_v47 }
 0x2e5   : > { %v860_v6 = vmul.f32 %v851_v31, %v844_v46 }
 0x2e6   : > { %v1004_v50 = vpack.c.bf16 %v875_v48, %v874_v45  ;;  %v861_v51 = vmul.f32 %v855_v34, %v845_v49 }
 0x2e7   : > { %v876_v8 = vadd.f32 %v867_v36, %v860_v6 }
 0x2e8   : > { %890 = vst [vmem:[%s272_s16] sm:$0xff] %v1004_v50  ;;  %v877_v52 = vadd.f32 %v871_v39, %v861_v51 }
 0x2ea   : > { %v1005_v53 = vpack.c.bf16 %v877_v52, %v876_v8 }
 0x2ec   : > { %891 = vst [vmem:[%s272_s16 + $0x8] sm:$0xff] %v1005_v53 }
 0x2ed   : > { %1240 = shalt.err (!%p1237_p3)
}
 0x2ee   : > { %s1241_s29 = scalar_lea.hbm %s1590_s20, 256  ;;  %s1245_s14 = scalar_lea.hbm %s1642_s7, 512 }
 0x2ef   : > { %p1242_p4 = scmp.ne.s32.totalorder %s1590_s20, %s1241_s29  ;;  %p1246_p9 = scmp.lt.u32.totalorder %s1590_s20, %s1642_s7 }
 0x2f0   : > { %p1247_p10 = scmp.lt.u32.totalorder %s1245_s14, %s1241_s29  ;;  %p1249_p12 = scmp.lt.u32.totalorder %s1241_s29, %s1590_s20 }
 0x2f1   : > { %p1243_p7 = pnand %p1242_p4, %p1374_p5 }
 0x2f2   : > { %p1248_p11 = por %p1247_p10, %p1246_p9 }
 0x2f3   : > { %p1244_p8 = pneg %p1243_p7 }
 0x2f4   : > { %p1250_p13 = por %p1249_p12, %p1248_p11 }
 0x2f6   : > { %p1251_p0 = pnand %p1250_p13, %p1244_p8 }
 0x2f8   : > { %1254 = shalt.err (!%p1251_p0)
}
 0x2f9   : > { %s1294_s18 = smov 128   ;;  %s1295_s19 = smov 8  }
 0x2fa   : > { %1148 = dma.vmem_to_hbm [thread:$0]  (%p1374_p5), %s1592_s17, 256, %s1590_s20, %s1594_s21, %s1294_s18, %s1294_s18, %s1295_s19  }
 0x2fb PF: > { %p1154_p1 = scmp.ge.s32.totalorder %s1289_s27, 2  ;;  %s922_s28 = sand.u32 1, %s1277_s24  }
 0x2fc   : > { %s923_s22 = scalar_lea.sflag [#allocation3], %s922_s28 }
 0x2fd   : > { %p1151_p2 = pnand %p1154_p1, %p1378_p6 }
 0x2ff   : > { %1272 = dma.done.wait (!%p1151_p2), %s923_s22, 256  }
 0x300   : > { %1274 = vsyncadd (!%p1151_p2), %s923_s22, 4294967040  ;;  %p17_p3 = scmp.ge.s32.totalorder %s1361_s30, 4   ;;  %s1645_s24 = smov %s1281_s25 }
 0x301   : > { %s1646_s25 = smov %s1285_s26  ;;  %s1647_s26 = smov %s1372_s10 }
 0x302   : > { %s1648_s27 = smov %s1361_s30  ;;  %19 = sbr.rel (!%p17_p3) target bundleno = 3 (0x3), region = 83 }
 0x309   :  { %928 = vsyncpa [#allocation3], 1 }
 0x30a   :  { %930 = vsyncpa [#allocation3 + $0x1], 1 }

</bundles_post_ra>
